<compile_context>
chip_gen: v7x
topology: tpu7x:2x2x1
jax: 0.10.0
libtpu: 0.0.40
codegen_flags: <defaults>
</compile_context>

<pallas_src>
import jax
import jax.numpy as jnp
from jax.experimental import pallas as pl
from jax.experimental.pallas import tpu as pltpu


def _make_fused_kernel(N, H, W, Cin, Cout, KH, KW, pad, eps):
    NH = N * H
    WCi = W * Cin
    WCo = W * Cout
    count = float(N * H * W)

    def kernel(x_ref, wb_ref, gamma_ref, beta_ref, o_ref, xp_ref):
        # x_ref   : (N, H, W*Cin)            channels-minor input
        # wb_ref  : (KH*KW*W*Cin, W*Cout)    block-diagonal im2col weight
        # gamma_ref, beta_ref : (1, Cout)
        # o_ref   : (N*H, W*Cout)            lane-dense output
        # xp_ref  : VMEM scratch (N, H+2*pad, (W+2*pad)*Cin)

        # ---- in-kernel halo: zero-fill scratch, copy the interior ----
        xp_ref[...] = jnp.zeros_like(xp_ref)
        xp_ref[:, pad:pad + H, pad * Cin:(pad + W) * Cin] = x_ref[...]

        # ---- im2col: concat the KH*KW shifted patches along K ----
        patches = []
        for kh in range(KH):
            for kw in range(KW):
                p = xp_ref[:, kh:kh + H, kw * Cin:kw * Cin + WCi]
                patches.append(p.reshape(NH, WCi))
        pmat = jnp.concatenate(patches, axis=1)           # (N*H, KH*KW*W*Cin)

        # ---- single MXU GEMM: conv for all batch elements at once ----
        acc = jnp.dot(pmat, wb_ref[...],
                      preferred_element_type=jnp.float32)  # (N*H, W*Cout) f32

        # ---- BatchNorm (training-mode batch stats) + ReLU, fused in VMEM ----
        # Channel c lives on lanes {w*Cout + c}; use one-hot selection matrices
        # (built from iotas, applied on the MXU) to reduce / broadcast per channel.
        lane = jax.lax.broadcasted_iota(jnp.int32, (WCo, Cout), 0)
        chan = jax.lax.broadcasted_iota(jnp.int32, (WCo, Cout), 1)
        sel = (lane % Cout == chan).astype(jnp.float32)         # (W*Cout, Cout)
        lane_t = jax.lax.broadcasted_iota(jnp.int32, (Cout, WCo), 1)
        chan_t = jax.lax.broadcasted_iota(jnp.int32, (Cout, WCo), 0)
        sel_t = (lane_t % Cout == chan_t).astype(jnp.float32)   # (Cout, W*Cout)

        row_sum = jnp.sum(acc, axis=0, keepdims=True)           # (1, W*Cout)
        row_sq = jnp.sum(acc * acc, axis=0, keepdims=True)      # (1, W*Cout)
        ch_sum = jnp.dot(row_sum, sel, preferred_element_type=jnp.float32)  # (1, Cout)
        ch_sq = jnp.dot(row_sq, sel, preferred_element_type=jnp.float32)    # (1, Cout)
        mean = ch_sum / count
        var = jnp.maximum(ch_sq / count - mean * mean, 0.0)     # biased batch variance
        scale = gamma_ref[...] / jnp.sqrt(var + eps)            # (1, Cout)
        shift = beta_ref[...] - mean * scale                    # (1, Cout)
        scale_l = jnp.dot(scale, sel_t, preferred_element_type=jnp.float32)  # (1, W*Cout)
        shift_l = jnp.dot(shift, sel_t, preferred_element_type=jnp.float32)  # (1, W*Cout)

        o_ref[...] = jnp.maximum(acc * scale_l + shift_l, 0.0).astype(o_ref.dtype)

    return kernel


def conv2d_block_forward(x_nchw, weight, bias, gamma, beta, eps=1e-5):
    """Forward pass of Conv2dBlock. x_nchw: (N, Cin, H, W) -> (N, Cout, H, W)."""
    x_nchw = x_nchw.astype(jnp.float32)
    weight = weight.astype(jnp.float32)
    N, Cin, H, W = x_nchw.shape
    KH, KW, _, Cout = weight.shape
    pad = KH // 2

    # NCHW -> (N, H, W*Cin): channels minor so the lane axis carries W*Cin.
    x2 = jnp.transpose(x_nchw, (0, 2, 3, 1)).reshape(N, H, W * Cin)

    # Block-diagonal im2col weight (tiny, one-time glue):
    # wb[t*W*Cin + w*Cin + ci, v*Cout + co] = weight[t//KW, t%KW, ci, co] * (w == v)
    w_taps = weight.reshape(KH * KW, Cin, Cout)
    eye_w = jnp.eye(W, dtype=jnp.float32)
    wb = jnp.einsum('tio,wv->twivo', w_taps, eye_w).reshape(KH * KW * W * Cin, W * Cout)

    # Conv bias is exactly cancelled by training-mode BN mean subtraction -> skip it.
    del bias

    kernel = _make_fused_kernel(N, H, W, Cin, Cout, KH, KW, pad, float(eps))

    out2 = pl.pallas_call(
        kernel,
        out_shape=jax.ShapeDtypeStruct((N * H, W * Cout), jnp.float32),
        grid=(1,),
        in_specs=[
            pl.BlockSpec((N, H, W * Cin), lambda i: (0, 0, 0)),
            pl.BlockSpec((KH * KW * W * Cin, W * Cout), lambda i: (0, 0)),
            pl.BlockSpec((1, Cout), lambda i: (0, 0)),
            pl.BlockSpec((1, Cout), lambda i: (0, 0)),
        ],
        out_specs=pl.BlockSpec((N * H, W * Cout), lambda i: (0, 0)),
        scratch_shapes=[
            pltpu.VMEM((N, H + 2 * pad, (W + 2 * pad) * Cin), jnp.float32),
        ],
        compiler_params=pltpu.CompilerParams(dimension_semantics=("arbitrary",)),
    )(
        x2,
        wb,
        gamma.reshape(1, Cout).astype(jnp.float32),
        beta.reshape(1, Cout).astype(jnp.float32),
    )

    # (N*H, W*Cout) -> NHWC -> NCHW
    return out2.reshape(N, H, W, Cout).transpose(0, 3, 1, 2)


def _reference_forward(x_nchw, weight, bias, gamma, beta, eps=1e-5):
    """Pure-JAX reference matching PyTorch Conv2d + BatchNorm2d(train) + ReLU."""
    y = jax.lax.conv_general_dilated(
        x_nchw.astype(jnp.float32), weight.astype(jnp.float32),
        window_strides=(1, 1), padding=((1, 1), (1, 1)),
        dimension_numbers=("NCHW", "HWIO", "NCHW"))
    y = y + bias[None, :, None, None]
    mean = jnp.mean(y, axis=(0, 2, 3), keepdims=True)
    var = jnp.mean((y - mean) ** 2, axis=(0, 2, 3), keepdims=True)
    yhat = (y - mean) / jnp.sqrt(var + eps)
    yhat = yhat * gamma[None, :, None, None] + beta[None, :, None, None]
    return jnp.maximum(yhat, 0.0)


if __name__ == "__main__":
    # Shapes consistent with Conv2dBlock(in_planes=4, out_planes=8, kernel_size=3, stride=1)
    N, Cin, H, W = 2, 4, 16, 16
    Cout, K = 8, 3

    key = jax.random.PRNGKey(0)
    kx, kw, kb = jax.random.split(key, 3)

    x = jax.random.normal(kx, (N, Cin, H, W), dtype=jnp.float32)

    fan_in = Cin * K * K
    bound = 1.0 / (fan_in ** 0.5)
    weight = jax.random.uniform(kw, (K, K, Cin, Cout), jnp.float32, -bound, bound)
    bias = jax.random.uniform(kb, (Cout,), jnp.float32, -bound, bound)
    gamma = jnp.ones((Cout,), jnp.float32)   # BatchNorm2d default weight
    beta = jnp.zeros((Cout,), jnp.float32)   # BatchNorm2d default bias

    fwd = jax.jit(conv2d_block_forward)
    out = jax.block_until_ready(fwd(x, weight, bias, gamma, beta))

    ref = jax.block_until_ready(_reference_forward(x, weight, bias, gamma, beta))
    assert out.shape == (N, Cout, H, W)
    assert jnp.allclose(out, ref, atol=1e-4, rtol=1e-4), "mismatch vs reference"

    print("KERNEL_OK")
</pallas_src>

<mosaic_0001>
module attributes {stable_mosaic.version = 11 : i64} {
  func.func @kernel(%arg0: i32, %arg1: memref<2x16x64xf32, #tpu.memory_space<vmem>>, %arg2: memref<576x128xf32, #tpu.memory_space<vmem>>, %arg3: memref<1x8xf32, #tpu.memory_space<vmem>>, %arg4: memref<1x8xf32, #tpu.memory_space<vmem>>, %arg5: memref<32x128xf32, #tpu.memory_space<vmem>>, %arg6: memref<2x18x72xf32, #tpu.memory_space<vmem>>) attributes {dimension_semantics = [#tpu.dimension_semantics<arbitrary>], iteration_bounds = array<i64: 1>, scalar_prefetch = 0 : i64, scratch_operands = 1 : i64, tpu.core_type = #tpu.core_type<tc>, window_params = [{pipeline_mode = #tpu.pipeline_mode<synchronous>, transform_indices = @transform_0, window_bounds = array<i64: 2, 16, 64>}, {pipeline_mode = #tpu.pipeline_mode<synchronous>, transform_indices = @transform_1, window_bounds = array<i64: 576, 128>}, {pipeline_mode = #tpu.pipeline_mode<synchronous>, transform_indices = @transform_2, window_bounds = array<i64: 1, 8>}, {pipeline_mode = #tpu.pipeline_mode<synchronous>, transform_indices = @transform_3, window_bounds = array<i64: 1, 8>}, {pipeline_mode = #tpu.pipeline_mode<synchronous>, transform_indices = @transform_4, window_bounds = array<i64: 32, 128>}]} {
    %cst = arith.constant 0.000000e+00 : f32
    %0 = vector.broadcast %cst : f32 to vector<2x18x72xf32>
    %c0 = arith.constant 0 : index
    %c0_0 = arith.constant 0 : index
    %c0_1 = arith.constant 0 : index
    %1 = vector.load %arg6[%c0, %c0_0, %c0_1] : memref<2x18x72xf32, #tpu.memory_space<vmem>>, vector<2x18x72xf32>
    tpu.vector_store %arg6[%c0, %c0_0, %c0_1], %0 {strides = array<i32>} : memref<2x18x72xf32, #tpu.memory_space<vmem>>, vector<2x18x72xf32>,
    %c0_2 = arith.constant 0 : index
    %c0_3 = arith.constant 0 : index
    %c0_4 = arith.constant 0 : index
    %2 = vector.load %arg1[%c0_2, %c0_3, %c0_4] : memref<2x16x64xf32, #tpu.memory_space<vmem>>, vector<2x16x64xf32>
    %c0_5 = arith.constant 0 : index
    %c1 = arith.constant 1 : index
    %c4 = arith.constant 4 : index
    %3 = vector.load %arg6[%c0_5, %c1, %c4] : memref<2x18x72xf32, #tpu.memory_space<vmem>>, vector<2x16x64xf32>
    tpu.vector_store %arg6[%c0_5, %c1, %c4], %2 {strides = array<i32>} : memref<2x18x72xf32, #tpu.memory_space<vmem>>, vector<2x16x64xf32>,
    %c0_6 = arith.constant 0 : index
    %c0_7 = arith.constant 0 : index
    %c0_8 = arith.constant 0 : index
    %4 = vector.load %arg6[%c0_6, %c0_7, %c0_8] : memref<2x18x72xf32, #tpu.memory_space<vmem>>, vector<2x16x64xf32>
    %5 = vector.shape_cast %4 : vector<2x16x64xf32> to vector<32x64xf32>
    %c0_9 = arith.constant 0 : index
    %c0_10 = arith.constant 0 : index
    %c4_11 = arith.constant 4 : index
    %6 = vector.load %arg6[%c0_9, %c0_10, %c4_11] : memref<2x18x72xf32, #tpu.memory_space<vmem>>, vector<2x16x64xf32>
    %7 = vector.shape_cast %6 : vector<2x16x64xf32> to vector<32x64xf32>
    %c0_12 = arith.constant 0 : index
    %c0_13 = arith.constant 0 : index
    %c8 = arith.constant 8 : index
    %8 = vector.load %arg6[%c0_12, %c0_13, %c8] : memref<2x18x72xf32, #tpu.memory_space<vmem>>, vector<2x16x64xf32>
    %9 = vector.shape_cast %8 : vector<2x16x64xf32> to vector<32x64xf32>
    %c0_14 = arith.constant 0 : index
    %c1_15 = arith.constant 1 : index
    %c0_16 = arith.constant 0 : index
    %10 = vector.load %arg6[%c0_14, %c1_15, %c0_16] : memref<2x18x72xf32, #tpu.memory_space<vmem>>, vector<2x16x64xf32>
    %11 = vector.shape_cast %10 : vector<2x16x64xf32> to vector<32x64xf32>
    %c0_17 = arith.constant 0 : index
    %c1_18 = arith.constant 1 : index
    %c4_19 = arith.constant 4 : index
    %12 = vector.load %arg6[%c0_17, %c1_18, %c4_19] : memref<2x18x72xf32, #tpu.memory_space<vmem>>, vector<2x16x64xf32>
    %13 = vector.shape_cast %12 : vector<2x16x64xf32> to vector<32x64xf32>
    %c0_20 = arith.constant 0 : index
    %c1_21 = arith.constant 1 : index
    %c8_22 = arith.constant 8 : index
    %14 = vector.load %arg6[%c0_20, %c1_21, %c8_22] : memref<2x18x72xf32, #tpu.memory_space<vmem>>, vector<2x16x64xf32>
    %15 = vector.shape_cast %14 : vector<2x16x64xf32> to vector<32x64xf32>
    %c0_23 = arith.constant 0 : index
    %c2 = arith.constant 2 : index
    %c0_24 = arith.constant 0 : index
    %16 = vector.load %arg6[%c0_23, %c2, %c0_24] : memref<2x18x72xf32, #tpu.memory_space<vmem>>, vector<2x16x64xf32>
    %17 = vector.shape_cast %16 : vector<2x16x64xf32> to vector<32x64xf32>
    %c0_25 = arith.constant 0 : index
    %c2_26 = arith.constant 2 : index
    %c4_27 = arith.constant 4 : index
    %18 = vector.load %arg6[%c0_25, %c2_26, %c4_27] : memref<2x18x72xf32, #tpu.memory_space<vmem>>, vector<2x16x64xf32>
    %19 = vector.shape_cast %18 : vector<2x16x64xf32> to vector<32x64xf32>
    %c0_28 = arith.constant 0 : index
    %c2_29 = arith.constant 2 : index
    %c8_30 = arith.constant 8 : index
    %20 = vector.load %arg6[%c0_28, %c2_29, %c8_30] : memref<2x18x72xf32, #tpu.memory_space<vmem>>, vector<2x16x64xf32>
    %21 = vector.shape_cast %20 : vector<2x16x64xf32> to vector<32x64xf32>
    %22 = tpu.concatenate %5, %7, %9, %11, %13, %15, %17, %19, %21 in 1 : vector<32x64xf32>, vector<32x64xf32>, vector<32x64xf32>, vector<32x64xf32>, vector<32x64xf32>, vector<32x64xf32>, vector<32x64xf32>, vector<32x64xf32>, vector<32x64xf32> -> vector<32x576xf32>
    %c0_31 = arith.constant 0 : index
    %c0_32 = arith.constant 0 : index
    %23 = vector.load %arg2[%c0_31, %c0_32] : memref<576x128xf32, #tpu.memory_space<vmem>>, vector<576x128xf32>
    %cst_33 = arith.constant dense<0.000000e+00> : vector<32x128xf32>
    %24 = tpu.matmul %22, %23, %cst_33 {dimension_numbers = #tpu.dot_dimension_numbers<[1], [0], [0], [1], [0, 0, 1, 1], [], []>} : vector<32x576xf32>, vector<576x128xf32>, vector<32x128xf32> -> vector<32x128xf32>
    %25 = tpu.iota {dimensions = array<i32: 0>} : vector<128x8xi32>
    %26 = tpu.iota {dimensions = array<i32: 1>} : vector<128x8xi32>
    %c8_i32 = arith.constant 8 : i32
    %c0_i32 = arith.constant 0 : i32
    %27 = arith.cmpi eq, %c8_i32, %c0_i32 : i32
    %c1_i32 = arith.constant 1 : i32
    %28 = arith.select %27, %c1_i32, %c8_i32 : i32
    %29 = vector.broadcast %28 : i32 to vector<128x8xi32>
    %30 = arith.remsi %25, %29 : vector<128x8xi32>
    %c0_i32_34 = arith.constant 0 : i32
    %31 = vector.broadcast %c0_i32_34 : i32 to vector<128x8xi32>
    %32 = arith.cmpi ne, %30, %31 : vector<128x8xi32>
    %c0_i32_35 = arith.constant 0 : i32
    %33 = vector.broadcast %c0_i32_35 : i32 to vector<128x8xi32>
    %34 = arith.cmpi slt, %30, %33 : vector<128x8xi32>
    %c0_i32_36 = arith.constant 0 : i32
    %35 = arith.cmpi slt, %28, %c0_i32_36 : i32
    %36 = vector.broadcast %35 : i1 to vector<128x8xi1>
    %37 = vector.broadcast %36 : vector<128x8xi1> to vector<128x8xi1>
    %38 = arith.xori %34, %37 : vector<128x8xi1>
    %39 = arith.andi %38, %32 : vector<128x8xi1>
    %40 = vector.broadcast %28 : i32 to vector<128x8xi32>
    %41 = arith.addi %30, %40 : vector<128x8xi32>
    %42 = arith.select %39, %41, %30 : vector<128x8xi1>, vector<128x8xi32>
    %43 = arith.cmpi eq, %42, %26 : vector<128x8xi32>
    %44 = arith.extui %43 : vector<128x8xi1> to vector<128x8xi32>
    %45 = arith.sitofp %44 : vector<128x8xi32> to vector<128x8xf32>
    %46 = tpu.iota {dimensions = array<i32: 1>} : vector<8x128xi32>
    %47 = tpu.iota {dimensions = array<i32: 0>} : vector<8x128xi32>
    %c8_i32_37 = arith.constant 8 : i32
    %c0_i32_38 = arith.constant 0 : i32
    %48 = arith.cmpi eq, %c8_i32_37, %c0_i32_38 : i32
    %c1_i32_39 = arith.constant 1 : i32
    %49 = arith.select %48, %c1_i32_39, %c8_i32_37 : i32
    %50 = vector.broadcast %49 : i32 to vector<8x128xi32>
    %51 = arith.remsi %46, %50 : vector<8x128xi32>
    %c0_i32_40 = arith.constant 0 : i32
    %52 = vector.broadcast %c0_i32_40 : i32 to vector<8x128xi32>
    %53 = arith.cmpi ne, %51, %52 : vector<8x128xi32>
    %c0_i32_41 = arith.constant 0 : i32
    %54 = vector.broadcast %c0_i32_41 : i32 to vector<8x128xi32>
    %55 = arith.cmpi slt, %51, %54 : vector<8x128xi32>
    %c0_i32_42 = arith.constant 0 : i32
    %56 = arith.cmpi slt, %49, %c0_i32_42 : i32
    %57 = vector.broadcast %56 : i1 to vector<8x128xi1>
    %58 = vector.broadcast %57 : vector<8x128xi1> to vector<8x128xi1>
    %59 = arith.xori %55, %58 : vector<8x128xi1>
    %60 = arith.andi %59, %53 : vector<8x128xi1>
    %61 = vector.broadcast %49 : i32 to vector<8x128xi32>
    %62 = arith.addi %51, %61 : vector<8x128xi32>
    %63 = arith.select %60, %62, %51 : vector<8x128xi1>, vector<8x128xi32>
    %64 = arith.cmpi eq, %63, %47 : vector<8x128xi32>
    %65 = arith.extui %64 : vector<8x128xi1> to vector<8x128xi32>
    %66 = arith.sitofp %65 : vector<8x128xi32> to vector<8x128xf32>
    %cst_43 = arith.constant dense<0.000000e+00> : vector<128xf32>
    %67 = vector.multi_reduction <add>, %24, %cst_43 [0] : vector<32x128xf32> to vector<128xf32>
    %68 = vector.shape_cast %67 : vector<128xf32> to vector<1x128xf32>
    %69 = arith.mulf %24, %24 : vector<32x128xf32>
    %cst_44 = arith.constant dense<0.000000e+00> : vector<128xf32>
    %70 = vector.multi_reduction <add>, %69, %cst_44 [0] : vector<32x128xf32> to vector<128xf32>
    %71 = vector.shape_cast %70 : vector<128xf32> to vector<1x128xf32>
    %cst_45 = arith.constant dense<0.000000e+00> : vector<1x8xf32>
    %72 = tpu.matmul %68, %45, %cst_45 {dimension_numbers = #tpu.dot_dimension_numbers<[1], [0], [0], [1], [0, 0, 1, 1], [], []>} : vector<1x128xf32>, vector<128x8xf32>, vector<1x8xf32> -> vector<1x8xf32>
    %cst_46 = arith.constant dense<0.000000e+00> : vector<1x8xf32>
    %73 = tpu.matmul %71, %45, %cst_46 {dimension_numbers = #tpu.dot_dimension_numbers<[1], [0], [0], [1], [0, 0, 1, 1], [], []>} : vector<1x128xf32>, vector<128x8xf32>, vector<1x8xf32> -> vector<1x8xf32>
    %cst_47 = arith.constant 5.120000e+02 : f32
    %74 = vector.broadcast %cst_47 : f32 to vector<1x8xf32>
    %75 = arith.divf %72, %74 : vector<1x8xf32>
    %cst_48 = arith.constant 5.120000e+02 : f32
    %76 = vector.broadcast %cst_48 : f32 to vector<1x8xf32>
    %77 = arith.divf %73, %76 : vector<1x8xf32>
    %78 = arith.mulf %75, %75 : vector<1x8xf32>
    %79 = arith.subf %77, %78 : vector<1x8xf32>
    %cst_49 = arith.constant 0.000000e+00 : f32
    %80 = vector.broadcast %cst_49 : f32 to vector<1x8xf32>
    %81 = arith.maximumf %79, %80 : vector<1x8xf32>
    %c0_50 = arith.constant 0 : index
    %c0_51 = arith.constant 0 : index
    %82 = vector.load %arg3[%c0_50, %c0_51] : memref<1x8xf32, #tpu.memory_space<vmem>>, vector<1x8xf32>
    %cst_52 = arith.constant 9.99999974E-6 : f32
    %83 = vector.broadcast %cst_52 : f32 to vector<1x8xf32>
    %84 = arith.addf %81, %83 : vector<1x8xf32>
    %85 = math.sqrt %84 : vector<1x8xf32>
    %86 = arith.divf %82, %85 : vector<1x8xf32>
    %c0_53 = arith.constant 0 : index
    %c0_54 = arith.constant 0 : index
    %87 = vector.load %arg4[%c0_53, %c0_54] : memref<1x8xf32, #tpu.memory_space<vmem>>, vector<1x8xf32>
    %88 = arith.mulf %75, %86 : vector<1x8xf32>
    %89 = arith.subf %87, %88 : vector<1x8xf32>
    %cst_55 = arith.constant dense<0.000000e+00> : vector<1x128xf32>
    %90 = tpu.matmul %86, %66, %cst_55 {dimension_numbers = #tpu.dot_dimension_numbers<[1], [0], [0], [1], [0, 0, 1, 1], [], []>} : vector<1x8xf32>, vector<8x128xf32>, vector<1x128xf32> -> vector<1x128xf32>
    %cst_56 = arith.constant dense<0.000000e+00> : vector<1x128xf32>
    %91 = tpu.matmul %89, %66, %cst_56 {dimension_numbers = #tpu.dot_dimension_numbers<[1], [0], [0], [1], [0, 0, 1, 1], [], []>} : vector<1x8xf32>, vector<8x128xf32>, vector<1x128xf32> -> vector<1x128xf32>
    %92 = vector.broadcast %90 : vector<1x128xf32> to vector<32x128xf32>
    %93 = arith.mulf %24, %92 : vector<32x128xf32>
    %94 = vector.broadcast %91 : vector<1x128xf32> to vector<32x128xf32>
    %95 = arith.addf %93, %94 : vector<32x128xf32>
    %cst_57 = arith.constant 0.000000e+00 : f32
    %96 = vector.broadcast %cst_57 : f32 to vector<32x128xf32>
    %97 = arith.maximumf %95, %96 : vector<32x128xf32>
    %c0_58 = arith.constant 0 : index
    %c0_59 = arith.constant 0 : index
    %98 = vector.load %arg5[%c0_58, %c0_59] : memref<32x128xf32, #tpu.memory_space<vmem>>, vector<32x128xf32>
    tpu.vector_store %arg5[%c0_58, %c0_59], %97 {strides = array<i32>} : memref<32x128xf32, #tpu.memory_space<vmem>>, vector<32x128xf32>,
    return
  }
  func.func @transform_0(%arg0: i32) -> (i32, i32, i32) {
    %c0_i32 = arith.constant 0 : i32
    %c0_i32_0 = arith.constant 0 : i32
    %c0_i32_1 = arith.constant 0 : i32
    %c0_i32_2 = arith.constant 0 : i32
    return %c0_i32, %c0_i32_0, %c0_i32_1 : i32, i32, i32
  }
  func.func @transform_1(%arg0: i32) -> (i32, i32) {
    %c0_i32 = arith.constant 0 : i32
    %c0_i32_0 = arith.constant 0 : i32
    %c0_i32_1 = arith.constant 0 : i32
    return %c0_i32, %c0_i32_0 : i32, i32
  }
  func.func @transform_2(%arg0: i32) -> (i32, i32) {
    %c0_i32 = arith.constant 0 : i32
    %c0_i32_0 = arith.constant 0 : i32
    %c0_i32_1 = arith.constant 0 : i32
    return %c0_i32, %c0_i32_0 : i32, i32
  }
  func.func @transform_3(%arg0: i32) -> (i32, i32) {
    %c0_i32 = arith.constant 0 : i32
    %c0_i32_0 = arith.constant 0 : i32
    %c0_i32_1 = arith.constant 0 : i32
    return %c0_i32, %c0_i32_0 : i32, i32
  }
  func.func @transform_4(%arg0: i32) -> (i32, i32) {
    %c0_i32 = arith.constant 0 : i32
    %c0_i32_0 = arith.constant 0 : i32
    %c0_i32_1 = arith.constant 0 : i32
    return %c0_i32, %c0_i32_0 : i32, i32
  }
}

</mosaic_0001>

<bundles_post_ra>
// kernel: conv2d_block_forward.1
= control target key start
LH: loop header
LB: loop body
LE: loop exit
PB: predicated region body
PF: predicated region fallthrough
CT: control target
= control target key end

     0   :  { %vm17_vm0 = vcmask 588800   ;;  %vm20_vm1 = vcmask 582656   ;;  %v1632_v2 = vmov 0.0   ;;  %s1633_s19 = smov 4   ;;  %vm45_vm2 = vcmask 556064   ;;  %s1634_s21 = smov 64   ;;  %s2096_s0 = inlined_call_operand.vmem [shape: f32[2,16,64], index: 0, kind: input, shape index: {}]   ;;  %s2097_s1 = inlined_call_operand.vmem [shape: f32[576,128], index: 1, kind: input, shape index: {}]   ;;  %s2098_s2 = inlined_call_operand.vmem [shape: f32[1,8], index: 2, kind: input, shape index: {}]   ;;  %s2099_s3 = inlined_call_operand.vmem [shape: f32[1,8], index: 3, kind: input, shape index: {}]   ;;  %s2100_s4 = inlined_call_operand.vmem [shape: f32[32,128], index: 4, kind: output, shape index: {}]  }
   0x1   :  { %v27_v0 = vld [vmem:[%s2096_s0 + $0x10] sm:$0xff]  ;;  %v25_v1 = vld [vmem:[%s2096_s0] sm:$0xff]  ;;  %22 = vst.msk [vmem:[#allocation2 + $0x18] sm:$0xff] %vm17_vm0, %v1632_v2  ;;  %23 = vst.msk [vmem:[#allocation2 + $0x20] sm:$0xff] %vm17_vm0, %v1632_v2  ;;  %s1635_s22 = smov 120   ;;  %s1636_s23 = smov 60  }
   0x2   :  { %18 = vst.msk [vmem:[#allocation2] sm:$0xff] %vm17_vm0, %v1632_v2  ;;  %19 = vst.msk [vmem:[#allocation2 + $0x8] sm:$0xff] %vm17_vm0, %v1632_v2  ;;  %37 = vrot.lane.b32.xlu1 %v27_v0, %s1633_s19  ;;  %33 = vrot.lane.b32.xlu0 %v25_v1, %s1633_s19  ;;  %v28_v3 = vld [vmem:[%s2096_s0 + $0x18] sm:$0xff]  ;;  %v26_v4 = vld [vmem:[%s2096_s0 + $0x8] sm:$0xff]  ;;  %s1637_s24 = smov 56   ;;  %s1638_s25 = smov 124  }
   0x3   :  { %24 = vst.msk [vmem:[#allocation2 + $0x28] sm:$0x3] %vm20_vm1, %v1632_v2  ;;  %21 = vst.msk [vmem:[#allocation2 + $0x10] sm:$0x3] %vm20_vm1, %v1632_v2  ;;  %v187_v5 = vld [vmem:[%s2097_s1 + $0x80] sm:$0xff]  ;;  %v188_v6 = vld [vmem:[%s2097_s1 + $0x88] sm:$0xff] }
   0x4   :  { %v171_v7 = vld [vmem:[%s2097_s1] sm:$0xff]  ;;  %v1434_v8 = vpack.c.bf16 %v188_v6, %v187_v5  ;;  %v172_v9 = vld [vmem:[%s2097_s1 + $0x8] sm:$0xff]  ;;  %v189_v10 = vld [vmem:[%s2097_s1 + $0x90] sm:$0xff]  ;;  %vm154_vm3 = vcmask 523264  }
   0x5   :  { %v190_v11 = vld [vmem:[%s2097_s1 + $0x98] sm:$0xff]  ;;  %v1436_v12 = vpack.c.bf16 %v172_v9, %v171_v7  ;;  %v219_v14 = vld [vmem:[%s2097_s1 + $0x180] sm:$0xff]  ;;  %v220_v15 = vld [vmem:[%s2097_s1 + $0x188] sm:$0xff] }
   0x6   :  { %39 = vrot.lane.b32.xlu1 %v28_v3, %s1633_s19  ;;  %35 = vrot.lane.b32.xlu0 %v26_v4, %s1633_s19  ;;  %v1438_v13 = vpack.c.bf16 %v190_v11, %v189_v10  ;;  %v173_v16 = vld [vmem:[%s2097_s1 + $0x10] sm:$0xff]  ;;  %v1466_v17 = vpack.c.bf16 %v220_v15, %v219_v14  ;;  %v174_v18 = vld [vmem:[%s2097_s1 + $0x18] sm:$0xff] }
   0x7   :  { %1435 = vmatprep.subr.bf16.mxu0 %v1434_v8  ;;  %v203_v19 = vld [vmem:[%s2097_s1 + $0x100] sm:$0xff]  ;;  %v204_v20 = vld [vmem:[%s2097_s1 + $0x108] sm:$0xff]  ;;  %v1440_v21 = vpack.c.bf16 %v174_v18, %v173_v16  ;;  %v221_v25 = vld [vmem:[%s2097_s1 + $0x190] sm:$0xff] }
   0x8   :  { %1437 = vmatpush3.bf16.msra.mxu0 %v1436_v12  ;;  %v1468_v22 = vpack.c.bf16 %v204_v20, %v203_v19  ;;  %v191_v23 = vld [vmem:[%s2097_s1 + $0xa0] sm:$0xff]  ;;  %v192_v24 = vld [vmem:[%s2097_s1 + $0xa8] sm:$0xff]  ;;  %1467 = vmatprep.subr.bf16.mxu1 %v1466_v17  ;;  %v222_v27 = vld [vmem:[%s2097_s1 + $0x198] sm:$0xff] }
   0x9   :  { %1439 = vmatprep.subr.bf16.mxu0 %v1438_v13  ;;  %v1442_v26 = vpack.c.bf16 %v192_v24, %v191_v23  ;;  %v175_v28 = vld [vmem:[%s2097_s1 + $0x20] sm:$0xff]  ;;  %v176_v29 = vld [vmem:[%s2097_s1 + $0x28] sm:$0xff]  ;;  %v1470_v30 = vpack.c.bf16 %v222_v27, %v221_v25  ;;  %v205_v31 = vld [vmem:[%s2097_s1 + $0x110] sm:$0xff] }
   0xa   :  { %1469 = vmatpush3.bf16.msra.mxu1 %v1468_v22  ;;  %v206_v32 = vld [vmem:[%s2097_s1 + $0x118] sm:$0xff]  ;;  %v193_v33 = vld [vmem:[%s2097_s1 + $0xb0] sm:$0xff]  ;;  %v223_v36 = vld [vmem:[%s2097_s1 + $0x1a0] sm:$0xff]  ;;  %v1444_v38 = vpack.c.bf16 %v176_v29, %v175_v28 }
   0xb   :  { %v1472_v34 = vpack.c.bf16 %v206_v32, %v205_v31  ;;  %v194_v35 = vld [vmem:[%s2097_s1 + $0xb8] sm:$0xff]  ;;  %v224_v37 = vld [vmem:[%s2097_s1 + $0x1a8] sm:$0xff]  ;;  %1471 = vmatprep.subr.bf16.mxu1 %v1470_v30  ;;  %v177_v40 = vld [vmem:[%s2097_s1 + $0x30] sm:$0xff] }
   0xc   :  { %1441 = vmatpush3.bf16.msra.mxu0 %v1440_v21  ;;  %v1474_v39 = vpack.c.bf16 %v224_v37, %v223_v36  ;;  %v207_v41 = vld [vmem:[%s2097_s1 + $0x120] sm:$0xff]  ;;  %v1446_v42 = vpack.c.bf16 %v194_v35, %v193_v33  ;;  %v178_v43 = vld [vmem:[%s2097_s1 + $0x38] sm:$0xff]  ;;  %v208_v44 = vld [vmem:[%s2097_s1 + $0x128] sm:$0xff] }
   0xd   :  { %1443 = vmatprep.subr.bf16.mxu0 %v1442_v26  ;;  %v195_v45 = vld [vmem:[%s2097_s1 + $0xc0] sm:$0xff]  ;;  %v1476_v46 = vpack.c.bf16 %v208_v44, %v207_v41  ;;  %v196_v47 = vld [vmem:[%s2097_s1 + $0xc8] sm:$0xff]  ;;  %v225_v48 = vld [vmem:[%s2097_s1 + $0x1b0] sm:$0xff]  ;;  %v1448_v53 = vpack.c.bf16 %v178_v43, %v177_v40 }
   0xe   :  { %1473 = vmatpush3.bf16.msra.mxu1 %v1472_v34  ;;  %v226_v49 = vld [vmem:[%s2097_s1 + $0x1b8] sm:$0xff]  ;;  %v209_v51 = vld [vmem:[%s2097_s1 + $0x130] sm:$0xff]  ;;  %v227_v54 = vld [vmem:[%s2097_s1 + $0x1c0] sm:$0xff]  ;;  %v1450_v55 = vpack.c.bf16 %v196_v47, %v195_v45 }
   0xf   :  { %1475 = vmatprep.subr.bf16.mxu1 %v1474_v39  ;;  %v1478_v50 = vpack.c.bf16 %v226_v49, %v225_v48  ;;  %v210_v52 = vld [vmem:[%s2097_s1 + $0x138] sm:$0xff]  ;;  %v179_v56 = vld [vmem:[%s2097_s1 + $0x40] sm:$0xff]  ;;  %v180_v57 = vld [vmem:[%s2097_s1 + $0x48] sm:$0xff] }
  0x10   :  { %1445 = vmatpush3.bf16.msra.mxu0 %v1444_v38  ;;  %v228_v58 = vld [vmem:[%s2097_s1 + $0x1c8] sm:$0xff]  ;;  %v1480_v59 = vpack.c.bf16 %v210_v52, %v209_v51  ;;  %v197_v60 = vld [vmem:[%s2097_s1 + $0xd0] sm:$0xff]  ;;  %v198_v61 = vld [vmem:[%s2097_s1 + $0xd8] sm:$0xff]  ;;  %v1452_v1 = vpack.c.bf16 %v180_v57, %v179_v56 }
  0x11   :  { %1447 = vmatprep.subr.bf16.mxu0 %v1446_v42  ;;  %v1482_v62 = vpack.c.bf16 %v228_v58, %v227_v54  ;;  %v211_v63 = vld [vmem:[%s2097_s1 + $0x140] sm:$0xff]  ;;  %v212_v0 = vld [vmem:[%s2097_s1 + $0x148] sm:$0xff]  ;;  %v229_v3 = vld [vmem:[%s2097_s1 + $0x1d0] sm:$0xff]  ;;  %v1454_v5 = vpack.c.bf16 %v198_v61, %v197_v60 }
  0x12   :  { %1477 = vmatpush3.bf16.msra.mxu1 %v1476_v46  ;;  %v230_v4 = vld [vmem:[%s2097_s1 + $0x1d8] sm:$0xff]  ;;  %v181_v6 = vld [vmem:[%s2097_s1 + $0x50] sm:$0xff]  ;;  %v1484_v8 = vpack.c.bf16 %v212_v0, %v211_v63  ;;  %v199_v9 = vld [vmem:[%s2097_s1 + $0xe0] sm:$0xff] }
  0x13   :  { %1479 = vmatprep.subr.bf16.mxu1 %v1478_v50  ;;  %v182_v7 = vld [vmem:[%s2097_s1 + $0x58] sm:$0xff]  ;;  %v200_v10 = vld [vmem:[%s2097_s1 + $0xe8] sm:$0xff]  ;;  %v1486_v11 = vpack.c.bf16 %v230_v4, %v229_v3  ;;  %v183_v16 = vld [vmem:[%s2097_s1 + $0x60] sm:$0xff] }
  0x14   :  { %1449 = vmatpush3.bf16.msra.mxu0 %v1448_v53  ;;  %v1456_v12 = vpack.c.bf16 %v182_v7, %v181_v6  ;;  %v1458_v13 = vpack.c.bf16 %v200_v10, %v199_v9  ;;  %v184_v17 = vld [vmem:[%s2097_s1 + $0x68] sm:$0xff]  ;;  %v213_v18 = vld [vmem:[%s2097_s1 + $0x150] sm:$0xff]  ;;  %v214_v20 = vld [vmem:[%s2097_s1 + $0x158] sm:$0xff] }
  0x15   :  { %1451 = vmatprep.subr.bf16.mxu0 %v1450_v55  ;;  %v1460_v19 = vpack.c.bf16 %v184_v17, %v183_v16  ;;  %v201_v21 = vld [vmem:[%s2097_s1 + $0xf0] sm:$0xff]  ;;  %v202_v22 = vld [vmem:[%s2097_s1 + $0xf8] sm:$0xff]  ;;  %v1488_v23 = vpack.c.bf16 %v214_v20, %v213_v18  ;;  %v231_v25 = vld [vmem:[%s2097_s1 + $0x1e0] sm:$0xff] }
  0x16   :  { %1481 = vmatpush3.bf16.msra.mxu1 %v1480_v59  ;;  %v1462_v24 = vpack.c.bf16 %v202_v22, %v201_v21  ;;  %v232_v26 = vld [vmem:[%s2097_s1 + $0x1e8] sm:$0xff]  ;;  %v185_v30 = vld [vmem:[%s2097_s1 + $0x70] sm:$0xff]  ;;  %v186_v31 = vld [vmem:[%s2097_s1 + $0x78] sm:$0xff] }
  0x17   :  { %1483 = vmatprep.subr.bf16.mxu1 %v1482_v62  ;;  %v1490_v29 = vpack.c.bf16 %v232_v26, %v231_v25  ;;  %v215_v32 = vld [vmem:[%s2097_s1 + $0x160] sm:$0xff]  ;;  %v1464_v33 = vpack.c.bf16 %v186_v31, %v185_v30  ;;  %v216_v34 = vld [vmem:[%s2097_s1 + $0x168] sm:$0xff]  ;;  %v233_v35 = vld [vmem:[%s2097_s1 + $0x1f0] sm:$0xff] }
  0x18   :  { %1453 = vmatpush3.bf16.msra.mxu0 %v1452_v1  ;;  %v234_v36 = vld [vmem:[%s2097_s1 + $0x1f8] sm:$0xff]  ;;  %v1492_v37 = vpack.c.bf16 %v216_v34, %v215_v32  ;;  %v217_v39 = vld [vmem:[%s2097_s1 + $0x170] sm:$0xff]  ;;  %v235_v42 = vld [vmem:[%s2097_s1 + $0x200] sm:$0xff] }
  0x19   :  { %1455 = vmatprep.subr.bf16.mxu0 %v1454_v5  ;;  %v1494_v38 = vpack.c.bf16 %v234_v36, %v233_v35  ;;  %v218_v40 = vld [vmem:[%s2097_s1 + $0x178] sm:$0xff]  ;;  %v236_v43 = vld [vmem:[%s2097_s1 + $0x208] sm:$0xff]  ;;  %v237_v6 = vld [vmem:[%s2097_s1 + $0x210] sm:$0xff] }
  0x1a   :  { %1485 = vmatpush3.bf16.msra.mxu1 %v1484_v8  ;;  %v1496_v41 = vpack.c.bf16 %v218_v40, %v217_v39  ;;  %v1888_v45 = vpack.c.bf16 %v236_v43, %v235_v42  ;;  %v238_v7 = vld [vmem:[%s2097_s1 + $0x218] sm:$0xff]  ;;  %v239_v18 = vld [vmem:[%s2097_s1 + $0x220] sm:$0xff]  ;;  %v241_v31 = vld [vmem:[%s2097_s1 + $0x230] sm:$0xff] }
  0x1b   :  { %1487 = vmatprep.subr.bf16.mxu1 %v1486_v11  ;;  %v242_v32 = vld [vmem:[%s2097_s1 + $0x238] sm:$0xff] }
  0x1c   :  { %1457 = vmatpush3.bf16.msra.mxu0 %v1456_v12 }
  0x1d   :  { %1459 = vmatprep.subr.bf16.mxu0 %v1458_v13 }
  0x1e   :  { %1489 = vmatpush3.bf16.msra.mxu1 %v1488_v23 }
  0x1f   :  { %1491 = vmatprep.subr.bf16.mxu1 %v1490_v29 }
  0x20   :  { %1461 = vmatpush3.bf16.msra.mxu0 %v1460_v19  ;;  %v240_v19 = vld [vmem:[%s2097_s1 + $0x228] sm:$0xff] }
  0x21   :  { %1463 = vmatprep.subr.bf16.mxu0 %v1462_v24  ;;  %v1506_v25 = vpack.c.bf16 %v240_v19, %v239_v18 }
  0x22   :  { %1493 = vmatpush3.bf16.msra.mxu1 %v1492_v37 }
  0x23   :  { %1495 = vmatprep.subr.bf16.mxu1 %v1494_v38  ;;  %v1510_v38 = vpack.c.bf16 %v242_v32, %v241_v31 }
  0x24   :  { %1465 = vmatpush3.bf16.msra.mxu0 %v1464_v33 }
  0x25   :  { %1499 = vmatprep.subr.bf16.mxu0 %v1888_v45 }
  0x26   :  { %1497 = vmatpush3.bf16.msra.mxu1 %v1496_v41 }
  0x74   :  { %v38_v14 = vpop.permute.xlu1 %37  ;;  %v34_v15 = vpop.permute.xlu0 %33 }
  0x75   :  { %48 = vst.msk [vmem:[#allocation2 + $0x19] sm:$0xff] %vm45_vm2, %v38_v14  ;;  %46 = vst.msk [vmem:[#allocation2 + $0x1] sm:$0xff] %vm45_vm2, %v34_v15  ;;  %v1502_v14 = vpack.c.bf16 %v238_v7, %v237_v6 }
  0x78   :  { %v40_v27 = vpop.permute.xlu1 %39  ;;  %v36_v28 = vpop.permute.xlu0 %35 }
  0x79   :  { %49 = vst.msk [vmem:[#allocation2 + $0x21] sm:$0xff] %vm45_vm2, %v40_v27  ;;  %47 = vst.msk [vmem:[#allocation2 + $0x9] sm:$0xff] %vm45_vm2, %v36_v28 }
  0x7c   :  { %v54_v44 = vld [vmem:[#allocation2 + $0x1] sm:$0xff]  ;;  %v1893_v51 = vld [vmem:[#allocation2 + $0x18] sm:$0xff] }
  0x7d   :  { %v50_v47 = vld [vmem:[#allocation2] sm:$0xff] }
  0x7e   :  { %v56_v54 = vld [vmem:[#allocation2 + $0x19] sm:$0xff] }
  0x80   :  { %v55_v46 = vld [vmem:[#allocation2 + $0x9] sm:$0xff]  ;;  %v57_v55 = vld [vmem:[#allocation2 + $0x21] sm:$0xff] }
  0x81   :  { %v1890_v48 = vld [vmem:[#allocation2 + $0x8] sm:$0xff]  ;;  %v1578_v49 = vpack.i.bf16 %v55_v46, %v54_v44  ;;  %v1898_v56 = vld [vmem:[#allocation2 + $0x20] sm:$0xff]  ;;  %v1608_v57 = vpack.i.bf16 %v57_v55, %v56_v54 }
  0x82   :  { %v1573_v50 = vpack.i.bf16 %v1890_v48, %v50_v47  ;;  %v58_v52 = vld [vmem:[#allocation2 + $0x2] sm:$0xff]  ;;  %v1603_v58 = vpack.i.bf16 %v1898_v56, %v1893_v51  ;;  %v1902_v59 = vld [vmem:[#allocation2 + $0x1a] sm:$0xff]  ;;  %v1906_v61 = vld [vmem:[#allocation2 + $0xa] sm:$0xff] }
  0x83   :  { %1579 = vrot.lane.b32.xlu1 %v1578_v49, %s1634_s21  ;;  %v1588_v53 = vpack.i.bf16 %v1893_v51, %v58_v52  ;;  %v1904_v60 = vld [vmem:[#allocation2 + $0x22] sm:$0xff]  ;;  %v1613_v63 = vpack.i.bf16 %v1898_v56, %v1906_v61 }
  0x84   :  { %1574 = vrot.lane.b32.xlu0 %v1573_v50, %s1635_s22  ;;  %v1618_v62 = vpack.i.bf16 %v1904_v60, %v1902_v59 }
  0x87   :  { %1589 = vrot.lane.b32.xlu1 %v1588_v53, %s1636_s23 }
  0x88   :  { %1584 = vrot.lane.b32.xlu0 %v1573_v50, %s1636_s23 }
  0x8b   :  { %1599 = vrot.lane.b32.xlu1 %v1578_v49, %s1637_s24 }
  0x8c   :  { %1594 = vrot.lane.b32.xlu0 %v1578_v49, %s1638_s25 }
  0x8f   :  { %1609 = vrot.lane.b32.xlu1 %v1608_v57, %s1634_s21 }
  0x90   :  { %1604 = vrot.lane.b32.xlu0 %v1603_v58, %s1635_s22 }
  0x93   :  { %1619 = vrot.lane.b32.xlu1 %v1618_v62, %s1636_s23 }
  0x94   :  { %1614 = vrot.lane.b32.xlu0 %v1613_v63, %s1636_s23 }
  0x97   :  { %122 = vrot.lane.b32.xlu1 %v56_v54, %s1637_s24 }
  0x98   :  { %1624 = vrot.lane.b32.xlu0 %v1608_v57, %s1638_s25 }
  0x9b   :  { %148 = vrot.lane.b32.xlu1 %v1906_v61, %s1635_s22 }
  0x9c   :  { %146 = vrot.lane.b32.xlu0 %v58_v52, %s1635_s22 }
  0x9f   :  { %150 = vrot.lane.b32.xlu1 %v1902_v59, %s1635_s22 }
  0xa0   :  { %124 = vrot.lane.b32.xlu0 %v57_v55, %s1637_s24 }
  0xa4   :  { %152 = vrot.lane.b32.xlu0 %v1904_v60, %s1635_s22 }
  0xf5   :  { %v1580_v0 = vpop.permute.xlu1 %1579 }
  0xf6   :  { %v1575_v1 = vpop.permute.xlu0 %1574  ;;  %v1581_v3 = vunpack.i.l.bf16 %v1580_v0  ;;  %v1582_v8 = vunpack.i.h.bf16 %v1580_v0 }
  0xf7   :  { %v1576_v4 = vunpack.i.l.bf16 %v1575_v1  ;;  %v1577_v9 = vunpack.i.h.bf16 %v1575_v1 }
  0xf9   :  { %v159_v5 = vsel %vm154_vm3, %v1576_v4, %v1581_v3  ;;  %v1590_v10 = vpop.permute.xlu1 %1589  ;;  %v160_v22 = vsel %vm154_vm3, %v1577_v9, %v1582_v8  ;;  %v506_v3 = vlaneseq  ;;  %v1639_v8 = vmov 0.0|0.0  }
  0xfa   :  { %v1585_v11 = vpop.permute.xlu0 %1584  ;;  %315 = vmatprep.mubr.f32.mxu0 %v159_v5  ;;  %v1591_v12 = vunpack.i.l.bf16 %v1590_v10  ;;  %v1592_v28 = vunpack.i.h.bf16 %v1590_v10  ;;  %1514 = vmatprep.subr.bf16.mxu1 %v1639_v8 }
  0xfb   :  { %v1586_v13 = vunpack.i.l.bf16 %v1585_v11  ;;  %v1587_v15 = vunpack.i.h.bf16 %v1585_v11  ;;  %v1965_v4 = vshrl.u32 %v506_v3, 7  ;;  %v1640_v11 = vmov 1.0|1.0  }
  0xfc   :  { %v167_v16 = vsel %vm154_vm3, %v58_v52, %v1591_v12  ;;  %v157_v43 = vsel %vm154_vm3, %v1893_v51, %v1592_v28 }
  0xfd   :  { %v155_v17 = vsel %vm154_vm3, %v50_v47, %v1586_v13  ;;  %v1600_v20 = vpop.permute.xlu1 %1599  ;;  %400 = vmatprep.mubr.f32.mxu1 %v167_v16  ;;  %v156_v26 = vsel %vm154_vm3, %v1890_v48, %v1587_v15  ;;  %v508_v5 = vadd.s32 8, %v1965_v4  ;;  %v529_v6 = vand.u32 7, %v1965_v4 }
  0xfe   :  { %v1595_v21 = vpop.permute.xlu0 %1594  ;;  %316 = vmatmul.mubr.f32.vlgmr.msra.gmra.mrb[0].mxu0 %v155_v17  ;;  %v1601_v23 = vunpack.i.l.bf16 %v1600_v20  ;;  %v1602_v39 = vunpack.i.h.bf16 %v1600_v20  ;;  %v509_v9 = vadd.s32 16, %v1965_v4  ;;  %v510_v10 = vadd.s32 24, %v1965_v4 }
  0xff   :  { %v1596_v24 = vunpack.i.l.bf16 %v1595_v21  ;;  %320 = vmatprep.mubr.f32.mxu0 %v160_v22  ;;  %1501 = vmatpush3.bf16.msra.mxu0 %v1888_v45  ;;  %v1597_v40 = vunpack.i.h.bf16 %v1595_v21  ;;  %v536_v7 = vand.u32 7, %v508_v5  ;;  %v512_v15 = vadd.s32 40, %v1965_v4 }
 0x100   :  { %1503 = vmatprep.subr.bf16.mxu0 %v1502_v14  ;;  %v543_v12 = vand.u32 7, %v509_v9  ;;  %v550_v13 = vand.u32 7, %v510_v10  ;;  %v513_v18 = vadd.s32 48, %v1965_v4  ;;  %v514_v19 = vadd.s32 56, %v1965_v4 }
 0x101   :  { %v163_v27 = vsel %vm154_vm3, %v1596_v24, %v1601_v23  ;;  %v1610_v29 = vpop.permute.xlu1 %1609  ;;  %v164_v51 = vsel %vm154_vm3, %v1597_v40, %v1602_v39  ;;  %v564_v17 = vand.u32 7, %v512_v15  ;;  %v515_v22 = vadd.s32 64, %v1965_v4 }
 0x102   :  { %v1605_v30 = vpop.permute.xlu0 %1604  ;;  %321 = vmatmul.mubr.f32.gmra.mrb[2].mxu0 %v156_v26  ;;  %401 = vmatmul.mubr.f32.vlgmr.msra.gmra.mrb[0].mxu1 %v163_v27  ;;  %v1612_v33 = vunpack.i.h.bf16 %v1610_v29  ;;  %v1611_v34 = vunpack.i.l.bf16 %v1610_v29  ;;  %v571_v20 = vand.u32 7, %v513_v18  ;;  %v578_v21 = vand.u32 7, %v514_v19 }
 0x103   :  { %v1607_v35 = vunpack.i.h.bf16 %v1605_v30  ;;  %v1606_v36 = vunpack.i.l.bf16 %v1605_v30  ;;  %1505 = vmatpush3.bf16.msra.mxu0 %v1502_v14  ;;  %v511_v14 = vadd.s32 32, %v1965_v4  ;;  %v516_v23 = vadd.s32 72, %v1965_v4 }
 0x104   :  { %1507 = vmatprep.subr.bf16.mxu0 %v1506_v25  ;;  %v585_v24 = vand.u32 7, %v515_v22  ;;  %v517_v26 = vadd.s32 80, %v1965_v4  ;;  %v518_v27 = vadd.s32 88, %v1965_v4  ;;  %v519_v30 = vadd.s32 96, %v1965_v4 }
 0x105   :  { %v161_v37 = vsel %vm154_vm3, %v1606_v36, %v1611_v34  ;;  %v1620_v41 = vpop.permute.xlu1 %1619  ;;  %v162_v47 = vsel %vm154_vm3, %v1607_v35, %v1612_v33  ;;  %v557_v16 = vand.u32 7, %v511_v14  ;;  %v520_v31 = vadd.s32 104, %v1965_v4 }
 0x106   :  { %v1615_v42 = vpop.permute.xlu0 %1614  ;;  %325 = vmatprep.mubr.f32.mxu0 %v161_v37  ;;  %v1621_v44 = vunpack.i.l.bf16 %v1620_v41  ;;  %v1622_v53 = vunpack.i.h.bf16 %v1620_v41  ;;  %v599_v28 = vand.u32 7, %v517_v26  ;;  %v606_v29 = vand.u32 7, %v518_v27 }
 0x107   :  { %v1617_v45 = vunpack.i.h.bf16 %v1615_v42  ;;  %v1616_v46 = vunpack.i.l.bf16 %v1615_v42  ;;  %326 = vmatmul.mubr.f32.gmra.mrb[4].mxu0 %v157_v43  ;;  %v613_v32 = vand.u32 7, %v519_v30  ;;  %v620_v33 = vand.u32 7, %v520_v31 }
 0x108   :  { %330 = vmatprep.mubr.f32.mxu0 %v162_v47  ;;  %1509 = vmatpush3.bf16.msra.mxu0 %v1506_v25  ;;  %v169_v55 = vsel %vm154_vm3, %v1902_v59, %v1621_v44  ;;  %v592_v25 = vand.u32 7, %v516_v23  ;;  %v521_v34 = vadd.s32 112, %v1965_v4  ;;  %v522_v35 = vadd.s32 120, %v1965_v4 }
 0x109   :  { %v168_v48 = vsel %vm154_vm3, %v1906_v61, %v1616_v46  ;;  %v158_v49 = vsel %vm154_vm3, %v1898_v56, %v1617_v45  ;;  %1511 = vmatprep.subr.bf16.mxu0 %v1510_v38  ;;  %v123_v50 = vpop.permute.xlu1 %122  ;;  %v170_v56 = vsel %vm154_vm3, %v1904_v60, %v1622_v53  ;;  %v1968_v60 = vand.u32 127, %v506_v3 }
 0x10a   :  { %v1625_v52 = vpop.permute.xlu0 %1624  ;;  %405 = vmatprep.mubr.f32.mxu1 %v168_v48  ;;  %v627_v36 = vand.u32 7, %v521_v34  ;;  %v634_v37 = vand.u32 7, %v522_v35 }
 0x10b   :  { %v1626_v54 = vunpack.i.l.bf16 %v1625_v52  ;;  %331 = vmatmul.mubr.f32.gmra.mrb[6].mxu0 %v158_v49  ;;  %406 = vmatmul.mubr.f32.gmra.mrb[2].mxu1 %v164_v51  ;;  %v1627_v62 = vunpack.i.h.bf16 %v1625_v52  ;;  %vm717_vm4 = vcmp.eq.s32.totalorder %v529_v6, %v1968_v60  ;;  %vm718_vm5 = vcmp.eq.s32.totalorder %v536_v7, %v1968_v60 }
 0x10c   :  { %410 = vmatprep.mubr.f32.mxu1 %v169_v55  ;;  %1513 = vmatpush3.bf16.msra.mxu0 %v1510_v38  ;;  %vm1515_vm6 = vmpackc.low %vm718_vm5, %vm717_vm4  ;;  %vm719_vm7 = vcmp.eq.s32.totalorder %v543_v12, %v1968_v60  ;;  %vm720_vm8 = vcmp.eq.s32.totalorder %v550_v13, %v1968_v60  ;;  %vm721_vm10 = vcmp.eq.s32.totalorder %v557_v16, %v1968_v60  ;;  %v769_v35 = vand.u32 7, %v1968_v60 }
 0x10d   :  { %v165_v57 = vsel %vm154_vm3, %v1626_v54, %v123_v50  ;;  %v149_v58 = vpop.permute.xlu1 %148  ;;  %1538 = vmatprep.subr.bf16.mxu0 %v1639_v8  ;;  %1516 = vmatpush3.bf16.msk.msra.mxu1 %vm1515_vm6, %v1640_v11  ;;  %vm1518_vm9 = vmpackc.low %vm720_vm8, %vm719_vm7  ;;  %vm722_vm11 = vcmp.eq.s32.totalorder %v564_v17, %v1968_v60  ;;  %vm723_vm13 = vcmp.eq.s32.totalorder %v571_v20, %v1968_v60 }
 0x10e   :  { %v147_v61 = vpop.permute.xlu0 %146  ;;  %1517 = vmatprep.subr.bf16.mxu1 %v1639_v8  ;;  %vm1521_vm12 = vmpackc.low %vm722_vm11, %vm721_vm10  ;;  %vm724_vm14 = vcmp.eq.s32.totalorder %v578_v21, %v1968_v60  ;;  %vm725_vm0 = vcmp.eq.s32.totalorder %v585_v24, %v1968_v60  ;;  %vm726_vm1 = vcmp.eq.s32.totalorder %v592_v25, %v1968_v60  ;;  %vm728_vm4 = vcmp.eq.s32.totalorder %v606_v29, %v1968_v60 }
 0x10f   :  { %411 = vmatmul.mubr.f32.gmra.mrb[4].mxu1 %v165_v57  ;;  %1348 = vmatprep.mubr.msk.f32.mxu0 %vm154_vm3, %v147_v61  ;;  %vm1524_vm15 = vmpackc.low %vm724_vm14, %vm723_vm13  ;;  %vm730_vm7 = vcmp.eq.s32.totalorder %v620_v33, %v1968_v60  ;;  %vm732_vm10 = vcmp.eq.s32.totalorder %v634_v37, %v1968_v60  ;;  %vm1641_vm11 = vmmov 0   ;;  %vm2062_vm13 = vcmp.eq.s32.totalorder %v769_v35, %v1965_v4 }
 0x110   :  { %415 = vmatprep.mubr.f32.mxu1 %v170_v56  ;;  %1349 = vmatmul.mubr.msk.f32.vlgmr.msra.gmra.mrb[8].mxu0 %vm154_vm3, %v149_v58  ;;  %vm1527_vm2 = vmpackc.low %vm726_vm1, %vm725_vm0  ;;  %v1642_v37 = vmov 1.0   ;;  %vm962_vm0 = vcmask 64512  }
 0x111   :  { %v151_v63 = vpop.permute.xlu1 %150  ;;  %1540 = vmatpush3.bf16.msk.msra.mxu0 %vm1515_vm6, %v1640_v11  ;;  %1519 = vmatpush3.bf16.msk.msra.mxu1 %vm1518_vm9, %v1640_v11  ;;  %vm729_vm6 = vcmp.eq.s32.totalorder %v613_v32, %v1968_v60 }
 0x112   :  { %v125_v0 = vpop.permute.xlu0 %124  ;;  %1351 = vmatprep.mubr.msk.f32.mxu0 %vm154_vm3, %v151_v63  ;;  %1541 = vmatprep.subr.bf16.mxu0 %v1639_v8  ;;  %vm1533_vm8 = vmpackc.low %vm730_vm7, %vm729_vm6 }
 0x113   :  { %v166_v59 = vsel %vm154_vm3, %v1627_v62, %v125_v0  ;;  %1520 = vmatprep.subr.bf16.mxu1 %v1639_v8 }
 0x114   :  { %416 = vmatmul.mubr.f32.gmra.mrb[6].mxu1 %v166_v59 }
 0x115   :  { %1543 = vmatpush3.bf16.msk.msra.mxu0 %vm1518_vm9, %v1640_v11  ;;  %1522 = vmatpush3.bf16.msk.msra.mxu1 %vm1521_vm12, %v1640_v11  ;;  %vm731_vm9 = vcmp.eq.s32.totalorder %v627_v36, %v1968_v60 }
 0x116   :  { %v153_v1 = vpop.permute.xlu0 %152  ;;  %1544 = vmatprep.subr.bf16.mxu0 %v1639_v8  ;;  %1523 = vmatprep.subr.bf16.mxu1 %v1639_v8 }
 0x117   :  { %1352 = vmatmul.mubr.msk.f32.gmra.mrb[10].mxu0 %vm154_vm3, %v153_v1  ;;  %vm727_vm3 = vcmp.eq.s32.totalorder %v599_v28, %v1968_v60  ;;  %1386 = vmatprep.mubr.msk.f32.mxu1 %vm1641_vm11, %v1632_v2 }
 0x118   :  { %vm1530_vm5 = vmpackc.low %vm728_vm4, %vm727_vm3  ;;  %1421 = vmatprep.mubr.msk.f32.mxu0 %vm1641_vm11, %v1632_v2 }
 0x119   :  { %1546 = vmatpush3.bf16.msk.msra.mxu0 %vm1521_vm12, %v1640_v11  ;;  %1525 = vmatpush3.bf16.msk.msra.mxu1 %vm1524_vm15, %v1640_v11  ;;  %vm1536_vm12 = vmpackc.low %vm732_vm10, %vm731_vm9 }
 0x11a   :  { %1547 = vmatprep.subr.bf16.mxu0 %v1639_v8  ;;  %1526 = vmatprep.subr.bf16.mxu1 %v1639_v8 }
 0x11d   :  { %1549 = vmatpush3.bf16.msk.msra.mxu0 %vm1524_vm15, %v1640_v11  ;;  %1528 = vmatpush3.bf16.msk.msra.mxu1 %vm1527_vm2, %v1640_v11 }
 0x11e   :  { %1550 = vmatprep.subr.bf16.mxu0 %v1639_v8  ;;  %1529 = vmatprep.subr.bf16.mxu1 %v1639_v8 }
 0x121   :  { %1552 = vmatpush3.bf16.msk.msra.mxu0 %vm1527_vm2, %v1640_v11  ;;  %1531 = vmatpush3.bf16.msk.msra.mxu1 %vm1530_vm5, %v1640_v11 }
 0x122   :  { %1553 = vmatprep.subr.bf16.mxu0 %v1639_v8  ;;  %1532 = vmatprep.subr.bf16.mxu1 %v1639_v8 }
 0x125   :  { %1555 = vmatpush3.bf16.msk.msra.mxu0 %vm1530_vm5, %v1640_v11  ;;  %1534 = vmatpush3.bf16.msk.msra.mxu1 %vm1533_vm8, %v1640_v11 }
 0x126   :  { %1556 = vmatprep.subr.bf16.mxu0 %v1639_v8  ;;  %1535 = vmatprep.subr.bf16.mxu1 %v1639_v8 }
 0x129   :  { %1558 = vmatpush3.bf16.msk.msra.mxu0 %vm1533_vm8, %v1640_v11  ;;  %1537 = vmatpush3.bf16.msk.msra.mxu1 %vm1536_vm12, %v1640_v11 }
 0x12a   :  { %1559 = vmatprep.subr.bf16.mxu0 %v1639_v8  ;;  %1424 = vmatprep.subr.mxu1 %v1632_v2 }
 0x12d   :  { %1561 = vmatpush3.bf16.msk.msra.mxu0 %vm1536_vm12, %v1640_v11 }
 0x1d1   :  { %v1226_v38 = vpop.f32.mrb[0].mxu0 }
 0x1d2   :  { %v1227_v39 = vpop.f32.mrb[1].mxu0 }
 0x1d3   :  { %v1228_v40 = vadd.f32 %v1227_v39, %v1226_v38 }
 0x1d5   :  { %v1229_v41 = vpop.f32.mrb[2].mxu0  ;;  %v1270_v42 = vpop.f32.mrb[0].mxu1 }
 0x1d6   :  { %v1230_v43 = vpop.f32.mrb[3].mxu0  ;;  %v1271_v44 = vpop.f32.mrb[1].mxu1 }
 0x1d7   :  { %v1231_v45 = vadd.f32 %v1230_v43, %v1229_v41  ;;  %v1272_v46 = vadd.f32 %v1271_v44, %v1270_v42 }
 0x1d9   :  { %v403_v47 = vadd.f32 %v1272_v46, %v1228_v40 }
 0x1da   :  { %v1232_v48 = vpop.f32.mrb[4].mxu0 }
 0x1db   :  { %v1233_v49 = vpop.f32.mrb[5].mxu0 }
 0x1dc   :  { %v1234_v50 = vadd.f32 %v1233_v49, %v1232_v48 }
 0x1de   :  { %v1235_v52 = vpop.f32.mrb[6].mxu0  ;;  %v1273_v51 = vpop.f32.mrb[2].mxu1 }
 0x1df   :  { %v1236_v53 = vpop.f32.mrb[7].mxu0  ;;  %v1274_v54 = vpop.f32.mrb[3].mxu1 }
 0x1e0   :  { %v1237_v55 = vadd.f32 %v1236_v53, %v1235_v52  ;;  %v1275_v57 = vadd.f32 %v1274_v54, %v1273_v51  ;;  %v948_v51 = vld [vmem:[%s2098_s2] sm:$0x1] }
 0x1e2   :  { %v1276_v58 = vpop.f32.mrb[4].mxu1  ;;  %v408_v61 = vadd.f32 %v1275_v57, %v1231_v45 }
 0x1e3   :  { %v1277_v56 = vpop.f32.mrb[5].mxu1  ;;  %v1350_v62 = vpop.f32.mrb[8].mxu0 }
 0x1e4   :  { %v1278_v63 = vadd.f32 %v1277_v56, %v1276_v58  ;;  %v2038_v0 = vadd.f32 %v1350_v62, %v408_v61  ;;  %v487_v59 = vpop.f32.mrb[9].mxu0  ;;  %v1111_v61 = vsub.s32 0, %v1965_v4 }
 0x1e5   :  { %v2040_v1 = vadd.f32 %v487_v59, %v403_v47 }
 0x1e6   :  { %v413_v3 = vadd.f32 %v1278_v63, %v1234_v50  ;;  %v790_v8 = vmul.f32 %v2038_v0, %v2038_v0 }
 0x1e7   :  { %v1279_v5 = vpop.f32.mrb[6].mxu1  ;;  %v789_v9 = vmul.f32 %v2040_v1, %v2040_v1  ;;  %v780_v13 = vadd.f32 %v2038_v0, %v2040_v1 }
 0x1e8   :  { %v1280_v6 = vpop.f32.mrb[7].mxu1 }
 0x1e9   :  { %v1281_v7 = vadd.f32 %v1280_v6, %v1279_v5  ;;  %v793_v16 = vadd.f32 %v790_v8, %v789_v9 }
 0x1ea   :  { %v1353_v10 = vpop.f32.mrb[10].mxu0 }
 0x1eb   :  { %v418_v11 = vadd.f32 %v1281_v7, %v1237_v55  ;;  %v497_v12 = vpop.f32.mrb[11].mxu0  ;;  %v959_v55 = vld [vmem:[%s2099_s3] sm:$0x1] }
 0x1ec   :  { %v2048_v14 = vadd.f32 %v497_v12, %v413_v3 }
 0x1ed   :  { %v2050_v15 = vadd.f32 %v1353_v10, %v418_v11 }
 0x1ee   :  { %v781_v17 = vadd.f32 %v780_v13, %v2048_v14  ;;  %v791_v18 = vmul.f32 %v2048_v14, %v2048_v14 }
 0x1ef   :  { %v792_v19 = vmul.f32 %v2050_v15, %v2050_v15 }
 0x1f0   :  { %v782_v20 = vadd.f32 %v781_v17, %v2050_v15  ;;  %v794_v21 = vadd.f32 %v793_v16, %v791_v18 }
 0x1f2   :  { %v783_v22 = vrot.slane %v782_v20, 4  ;;  %v795_v23 = vadd.f32 %v794_v21, %v792_v19 }
 0x1f4   :  { %v784_v24 = vadd.f32 %v783_v22, %v782_v20  ;;  %v796_v25 = vrot.slane %v795_v23, 4 }
 0x1f6   :  { %v785_v26 = vrot.slane %v784_v24, 2  ;;  %v797_v27 = vadd.f32 %v796_v25, %v795_v23 }
 0x1f8   :  { %v786_v28 = vadd.f32 %v785_v26, %v784_v24  ;;  %v798_v29 = vrot.slane %v797_v27, 2 }
 0x1fa   :  { %v787_v30 = vrot.slane %v786_v28, 1  ;;  %v799_v31 = vadd.f32 %v798_v29, %v797_v27 }
 0x1fc   :  { %v788_v32 = vadd.f32 %v787_v30, %v786_v28  ;;  %v800_v33 = vrot.slane %v799_v31, 1 }
 0x1fe   :  { %1387 = vmatmul.mubr.f32.vlgmr.msra.gmra.mrb[8].mxu1 %v788_v32  ;;  %v801_v34 = vadd.f32 %v800_v33, %v799_v31 }
 0x1ff   :  { %1426 = vmatprep.mubr.msk.f32.mxu1 %vm1641_vm11, %v1632_v2  ;;  %1425 = vmatpush3.msk.msra.mxu1 %vm2062_vm13, %v1642_v37 }
 0x200   :  { %1422 = vmatmul.mubr.f32.vlgmr.msra.gmra.mrb[12].mxu0 %v801_v34  ;;  %1429 = vmatprep.subr.mxu1 %v1632_v2 }
 0x2d1   :  { %v868_v38 = vpop.f32.mrb[8].mxu1 }
 0x2d2   :  { %v943_v39 = vmul.f32 0.001953125, %v868_v38  ;;  %v1388_v40 = vpop.f32.mrb[9].mxu1 }
 0x2d3   :  { %v938_v41 = vpop.f32.mrb[12].mxu0 }
 0x2d4   :  { %v945_v42 = vmul.f32 %v943_v39, %v943_v39  ;;  %v944_v43 = vmul.f32 0.001953125, %v938_v41  ;;  %v1423_v44 = vpop.f32.mrb[13].mxu0 }
 0x2d6   :  { %v946_v45 = vsub.f32 %v944_v43, %v945_v42 }
 0x2d8   :  { %v947_v60 = vmax.f32 %v946_v45, 0.0 }
 0x2da   :  { %v949_v46 = vadd.f32 1e-05, %v947_v60 }
 0x2dc   :  { %1628 = vrsqrt.f32 %v949_v46  ;;  %vm952_vm14 = vcmp.eq.f32.partialorder %v949_v46, inf  ;;  %v955_v49 = vand.u32 2147483648, %v949_v46  ;;  %vm954_vm15 = vcmp.eq.f32.partialorder %v949_v46, 0.0 }
 0x2e6   :  { %v1629_v47 = vpop.eup %1628 }
 0x2e7   :  { %v951_v48 = vmul.f32 %v1629_v47, %v949_v46 }
 0x2e9   :  { %v953_v50 = vsel %vm952_vm14, %v949_v46, %v951_v48 }
 0x2ea   :  { %v956_v52 = vsel %vm954_vm15, %v955_v49, %v953_v50 }
 0x2eb   :  { %1630 = vrcp.f32 %v956_v52 }
 0x2f5   :  { %v1631_v53 = vpop.eup %1630 }
 0x2f6   :  { %v958_v54 = vmul.f32 %v1631_v53, %v948_v51 }
 0x2f8   :  { %1427 = vmatmul.mubr.msk.f32.vlgmr.msra.gmra.mrb[10].mxu1 %vm962_vm0, %v958_v54  ;;  %v960_v57 = vmul.f32 %v958_v54, %v943_v39 }
 0x2f9   :  { %1430 = vmatpush3.msk.msra.mxu1 %vm2062_vm13, %v1642_v37  ;;  %1431 = vmatprep.mubr.msk.f32.mxu1 %vm1641_vm11, %v1632_v2 }
 0x2fa   :  { %v961_v58 = vsub.f32 %v959_v55, %v960_v57 }
 0x2fc   :  { %1432 = vmatmul.mubr.msk.f32.vlgmr.msra.gmra.mrb[12].mxu1 %vm962_vm0, %v961_v58 }
 0x3cb   :  { %v1032_v56 = vpop.f32.mrb[10].mxu1 }
 0x3cc   :  { %v1112_v62 = vrot.slane %v1032_v56, %v1111_v61  ;;  %v1428_v63 = vpop.f32.mrb[11].mxu1 }
 0x3ce   :  { %v1113_v59 = vmul.f32 %v1112_v62, %v2040_v1  ;;  %v1114_v5 = vmul.f32 %v1112_v62, %v2038_v0  ;;  %v1115_v6 = vmul.f32 %v1112_v62, %v2048_v14  ;;  %v1116_v7 = vmul.f32 %v1112_v62, %v2050_v15 }
 0x3cf   :  { %v1105_v3 = vpop.f32.mrb[12].mxu1 }
 0x3d0   :  { %v1120_v8 = vrot.slane %v1105_v3, %v1111_v61  ;;  %v1433_v9 = vpop.f32.mrb[13].mxu1 }
 0x3d2   :  { %v1121_v10 = vadd.f32 %v1120_v8, %v1113_v59  ;;  %v1122_v2 = vadd.f32 %v1120_v8, %v1114_v5  ;;  %v1123_v11 = vadd.f32 %v1120_v8, %v1115_v6  ;;  %v1124_v12 = vadd.f32 %v1120_v8, %v1116_v7 }
 0x3d4   :  { %v1125_v13 = vmax.f32 %v1121_v10, 0.0  ;;  %v1126_v4 = vmax.f32 %v1122_v2, 0.0  ;;  %v1127_v16 = vmax.f32 %v1123_v11, 0.0  ;;  %v1128_v17 = vmax.f32 %v1124_v12, 0.0 }
 0x3d6   :  { %1129 = vst [vmem:[%s2100_s4] sm:$0xff] %v1125_v13  ;;  %1130 = vst [vmem:[%s2100_s4 + $0x8] sm:$0xff] %v1126_v4 }
 0x3d7   :  { %1131 = vst [vmem:[%s2100_s4 + $0x10] sm:$0xff] %v1127_v16  ;;  %1132 = vst [vmem:[%s2100_s4 + $0x18] sm:$0xff] %v1128_v17 }

</bundles_post_ra>
